<compile_context>
chip_gen: v6e
topology: v6e:2x2x1
jax: 0.10.0
libtpu: 0.0.40
codegen_flags: <defaults>
</compile_context>

<pallas_src>
import jax
import jax.numpy as jnp
from jax.experimental import pallas as pl
from jax.experimental.pallas import tpu as pltpu

EPS = 1e-5

# Logical (PyTorch) dims and lane/sublane-padded dims.
D_IN, H1, H2, H3, D_OUT = 30, 100, 200, 100, 24
PK_IN = 32                    # w1 contraction dim padded 30 -> 32 (was 128)
PH1, PH2, PH3, PD_OUT = 128, 256, 128, 128

# Row offsets inside the narrow (128-lane) parameter pack.
# All segment offsets/sizes are multiples of 16 so both f32 and bf16 packs slice
# on native sublane-tile boundaries.
NP_W1, NP_W3, NP_W4, NP_VEC = 0, 32, 288, 416
NP_ROWS = 432        # 32 (w1) + 256 (w3) + 128 (w4) + 16 (row-vectors, padded)
# Row offsets inside the wide (256-lane) parameter pack.
WP_W2, WP_VEC = 0, 128
WP_ROWS = 144        # 128 (w2) + 16 (row-vectors, padded)

VMEM_BUDGET_BYTES = 56 * 1024 * 1024   # conservative: fits v7x's 64 MiB physical


def network_dynamics_kernel(x_ref, np_ref, wp_ref, o_ref, xpad_ref):
    B = x_ref.shape[0]
    inv_b = 1.0 / B

    def bn_relu(h, gamma, beta):
        # Train-mode BatchNorm1d (biased variance) via single-pass moments,
        # folded into a single scale/shift FMA, then ReLU.
        s1 = jnp.sum(h, axis=0, keepdims=True)
        s2 = jnp.sum(h * h, axis=0, keepdims=True)
        mean = s1 * inv_b
        var = jnp.maximum(s2 * inv_b - mean * mean, 0.0)   # cancellation guard
        scale = gamma * jax.lax.rsqrt(var + EPS)           # (1, F) row — EUP, cheap
        shift = beta - mean * scale
        return jnp.maximum(h * scale + shift, 0.0)

    # Zero-extend the raw (B, 30) input to (B, 32) inside the kernel (no external
    # XLA pad op).  Lanes 30..31 multiply zero rows of w1, but zero them anyway so
    # stale VMEM contents (inf/NaN) can never leak in.
    xpad_ref[...] = jnp.zeros_like(xpad_ref)
    xpad_ref[:, 0:D_IN] = x_ref[...]
    x = xpad_ref[...]

    mm_dtype = np_ref.dtype   # f32 or bf16; matmuls accumulate in f32 either way

    # Static, tile-aligned slices out of the two packed parameter buffers.
    w1 = np_ref[NP_W1:NP_W1 + PK_IN, :]                    # (32, 128)
    w3 = np_ref[NP_W3:NP_W3 + PH2, :]                      # (256, 128)
    w4 = np_ref[NP_W4:NP_W4 + PH3, :]                      # (128, 128)
    g1 = np_ref[NP_VEC + 0:NP_VEC + 1, :].astype(jnp.float32)   # (1, 128)
    be1 = np_ref[NP_VEC + 1:NP_VEC + 2, :].astype(jnp.float32)
    g3 = np_ref[NP_VEC + 2:NP_VEC + 3, :].astype(jnp.float32)
    be3 = np_ref[NP_VEC + 3:NP_VEC + 4, :].astype(jnp.float32)
    b4 = np_ref[NP_VEC + 4:NP_VEC + 5, :].astype(jnp.float32)

    w2 = wp_ref[WP_W2:WP_W2 + PH1, :]                      # (128, 256)
    g2 = wp_ref[WP_VEC + 0:WP_VEC + 1, :].astype(jnp.float32)   # (1, 256)
    be2 = wp_ref[WP_VEC + 1:WP_VEC + 2, :].astype(jnp.float32)

    # b1/b2/b3 intentionally omitted: exactly cancelled by BN mean subtraction.
    h = jnp.dot(x.astype(mm_dtype), w1, preferred_element_type=jnp.float32)
    h = bn_relu(h, g1, be1)
    h = jnp.dot(h.astype(mm_dtype), w2, preferred_element_type=jnp.float32)
    h = bn_relu(h, g2, be2)
    h = jnp.dot(h.astype(mm_dtype), w3, preferred_element_type=jnp.float32)
    h = bn_relu(h, g3, be3)
    o_ref[...] = (
        jnp.dot(h.astype(mm_dtype), w4, preferred_element_type=jnp.float32) + b4
    )


def pack_params(params, dtype=jnp.float32):
    """Pack PyTorch-layout params into two lane-aligned buffers.

    Weights stored as (in_features, out_features); padded regions are zero, which
    propagates exactly zero through linear -> BN -> ReLU (gamma/beta are zero in
    padded lanes too).
    """
    np_buf = jnp.zeros((NP_ROWS, 128), jnp.float32)
    np_buf = np_buf.at[NP_W1:NP_W1 + D_IN, 0:H1].set(params["w1"])
    np_buf = np_buf.at[NP_W3:NP_W3 + H2, 0:H3].set(params["w3"])
    np_buf = np_buf.at[NP_W4:NP_W4 + H3, 0:D_OUT].set(params["w4"])
    np_buf = np_buf.at[NP_VEC + 0, 0:H1].set(params["g1"][0])
    np_buf = np_buf.at[NP_VEC + 1, 0:H1].set(params["be1"][0])
    np_buf = np_buf.at[NP_VEC + 2, 0:H3].set(params["g3"][0])
    np_buf = np_buf.at[NP_VEC + 3, 0:H3].set(params["be3"][0])
    np_buf = np_buf.at[NP_VEC + 4, 0:D_OUT].set(params["b4"][0])

    wp_buf = jnp.zeros((WP_ROWS, 256), jnp.float32)
    wp_buf = wp_buf.at[WP_W2:WP_W2 + H1, 0:H2].set(params["w2"])
    wp_buf = wp_buf.at[WP_VEC + 0, 0:H2].set(params["g2"][0])
    wp_buf = wp_buf.at[WP_VEC + 1, 0:H2].set(params["be2"][0])
    return np_buf.astype(dtype), wp_buf.astype(dtype)


def network_dynamics_forward(x, np_buf, wp_buf, *, vmem_limit_bytes=None):
    """x: (B, 30); np_buf/wp_buf from pack_params. Returns (B, 24) float32."""
    B = x.shape[0]
    if x.shape != (B, D_IN):
        raise ValueError(f"expected input shape (B, {D_IN}), got {x.shape}")
    if B < 2:
        raise ValueError("train-mode BatchNorm1d requires batch size >= 2")
    x = x.astype(jnp.float32)

    param_bytes = int(
        np_buf.size * np_buf.dtype.itemsize + wp_buf.size * wp_buf.dtype.itemsize
    )
    # ~2.6 KB/row of f32 activations; 4x slack for temporaries / double buffers.
    act_bytes_per_row = 4 * (PK_IN + PH1 + PH2 + PH3 + PD_OUT)
    est_vmem = 2 * param_bytes + 4 * act_bytes_per_row * B + (2 << 20)
    if est_vmem > VMEM_BUDGET_BYTES:
        raise ValueError(
            f"batch={B} needs ~{est_vmem >> 20} MiB VMEM which exceeds the "
            f"{VMEM_BUDGET_BYTES >> 20} MiB budget of this grid-less kernel; "
            "split the batch across calls (see TODO(synk) for batch-tiled BN)."
        )
    if vmem_limit_bytes is None:
        vmem_limit_bytes = int(min(max(est_vmem, 32 << 20), VMEM_BUDGET_BYTES))

    flops = 2 * B * (D_IN * H1 + H1 * H2 + H2 * H3 + H3 * D_OUT)
    transcendentals = 3 * (H1 + H2 + H3)   # per-feature rsqrt in the three BNs
    bytes_accessed = param_bytes + B * (D_IN + PD_OUT) * 4

    vmem = pl.BlockSpec(memory_space=pltpu.MemorySpace.VMEM)
    out = pl.pallas_call(
        network_dynamics_kernel,
        out_shape=jax.ShapeDtypeStruct((B, PD_OUT), jnp.float32),
        in_specs=[vmem, vmem, vmem],
        out_specs=vmem,
        scratch_shapes=[pltpu.VMEM((B, PK_IN), jnp.float32)],
        compiler_params=pltpu.CompilerParams(vmem_limit_bytes=vmem_limit_bytes),
        cost_estimate=pl.CostEstimate(
            flops=flops, transcendentals=transcendentals,
            bytes_accessed=bytes_accessed,
        ),
    )(x, np_buf, wp_buf)
    return out[:, :D_OUT]


def init_params(key):
    """PyTorch-default init: Linear W,b ~ U(-1/sqrt(fan_in), 1/sqrt(fan_in));
    BatchNorm1d gamma=1, beta=0. Weights stored as (in_features, out_features)."""
    dims = [(D_IN, H1), (H1, H2), (H2, H3), (H3, D_OUT)]
    params = {}
    keys = jax.random.split(key, 2 * len(dims))
    for idx, (fan_in, fan_out) in enumerate(dims, start=1):
        bound = 1.0 / jnp.sqrt(fan_in)
        wk, bk = keys[2 * (idx - 1)], keys[2 * (idx - 1) + 1]
        params[f"w{idx}"] = jax.random.uniform(
            wk, (fan_in, fan_out), jnp.float32, -bound, bound
        )
        params[f"b{idx}"] = jax.random.uniform(
            bk, (1, fan_out), jnp.float32, -bound, bound
        )
    for idx, width in zip((1, 2, 3), (H1, H2, H3)):
        params[f"g{idx}"] = jnp.ones((1, width), jnp.float32)
        params[f"be{idx}"] = jnp.zeros((1, width), jnp.float32)
    return params


def reference_forward(x, params):
    """Pure-JAX reference of the ORIGINAL module semantics (all biases included,
    two-pass train-mode BN). Validates bias-elision / padding / one-pass moments."""
    def bn_relu(h, gamma, beta):
        mean = jnp.mean(h, axis=0, keepdims=True)
        var = jnp.mean((h - mean) ** 2, axis=0, keepdims=True)
        return jnp.maximum((h - mean) / jnp.sqrt(var + EPS) * gamma + beta, 0.0)

    h = x @ params["w1"] + params["b1"]
    h = bn_relu(h, params["g1"], params["be1"])
    h = h @ params["w2"] + params["b2"]
    h = bn_relu(h, params["g2"], params["be2"])
    h = h @ params["w3"] + params["b3"]
    h = bn_relu(h, params["g3"], params["be3"])
    return h @ params["w4"] + params["b4"]


if __name__ == "__main__":
    key = jax.random.PRNGKey(0)
    pkey, xkey = jax.random.split(key)
    params = init_params(pkey)

    B = 8  # batch > 1 so training-mode BatchNorm is well-defined
    x = jax.random.normal(xkey, (B, D_IN), jnp.float32)
    ref = reference_forward(x, params)

    # Full-precision path: must match the module semantics tightly.
    np32, wp32 = pack_params(params, jnp.float32)
    out32 = jax.block_until_ready(network_dynamics_forward(x, np32, wp32))
    assert out32.shape == (B, D_OUT), out32.shape
    assert jnp.allclose(out32, ref, atol=2e-4, rtol=2e-4), "f32 mismatch vs reference"

    # bf16-weight path (halves the param DMA, faster MXU); f32 accumulation and
    # f32 BN math, so only weight/activation quantization error remains.
    np16, wp16 = pack_params(params, jnp.bfloat16)
    out16 = jax.block_until_ready(network_dynamics_forward(x, np16, wp16))
    assert out16.shape == (B, D_OUT), out16.shape
    assert jnp.allclose(out16, ref, atol=1e-1, rtol=1e-1), "bf16 mismatch vs reference"

    print("KERNEL_OK")
</pallas_src>

<mosaic_0001>
module attributes {stable_mosaic.version = 11 : i64} {
  func.func @network_dynamics_kernel(%arg0: memref<8x30xf32, #tpu.memory_space<vmem>>, %arg1: memref<432x128xf32, #tpu.memory_space<vmem>>, %arg2: memref<144x256xf32, #tpu.memory_space<vmem>>, %arg3: memref<8x128xf32, #tpu.memory_space<vmem>>, %arg4: memref<8x32xf32, #tpu.memory_space<vmem>>) attributes {dimension_semantics = [], scalar_prefetch = 0 : i64, scratch_operands = 1 : i64, tpu.core_type = #tpu.core_type<tc>} {
    %cst = arith.constant 0.000000e+00 : f32
    %0 = vector.broadcast %cst : f32 to vector<8x32xf32>
    %c0 = arith.constant 0 : index
    %c0_0 = arith.constant 0 : index
    %1 = vector.load %arg4[%c0, %c0_0] : memref<8x32xf32, #tpu.memory_space<vmem>>, vector<8x32xf32>
    tpu.vector_store %arg4[%c0, %c0_0], %0 {strides = array<i32>} : memref<8x32xf32, #tpu.memory_space<vmem>>, vector<8x32xf32>,
    %c0_1 = arith.constant 0 : index
    %c0_2 = arith.constant 0 : index
    %2 = vector.load %arg0[%c0_1, %c0_2] : memref<8x30xf32, #tpu.memory_space<vmem>>, vector<8x30xf32>
    %c0_3 = arith.constant 0 : index
    %c0_4 = arith.constant 0 : index
    %3 = vector.load %arg4[%c0_3, %c0_4] : memref<8x32xf32, #tpu.memory_space<vmem>>, vector<8x30xf32>
    tpu.vector_store %arg4[%c0_3, %c0_4], %2 {strides = array<i32>} : memref<8x32xf32, #tpu.memory_space<vmem>>, vector<8x30xf32>,
    %c0_5 = arith.constant 0 : index
    %c0_6 = arith.constant 0 : index
    %4 = vector.load %arg4[%c0_5, %c0_6] : memref<8x32xf32, #tpu.memory_space<vmem>>, vector<8x32xf32>
    %c0_7 = arith.constant 0 : index
    %c0_8 = arith.constant 0 : index
    %5 = vector.load %arg1[%c0_7, %c0_8] : memref<432x128xf32, #tpu.memory_space<vmem>>, vector<32x128xf32>
    %c32 = arith.constant 32 : index
    %c0_9 = arith.constant 0 : index
    %6 = vector.load %arg1[%c32, %c0_9] : memref<432x128xf32, #tpu.memory_space<vmem>>, vector<256x128xf32>
    %c288 = arith.constant 288 : index
    %c0_10 = arith.constant 0 : index
    %7 = vector.load %arg1[%c288, %c0_10] : memref<432x128xf32, #tpu.memory_space<vmem>>, vector<128x128xf32>
    %c416 = arith.constant 416 : index
    %c0_11 = arith.constant 0 : index
    %8 = vector.load %arg1[%c416, %c0_11] : memref<432x128xf32, #tpu.memory_space<vmem>>, vector<1x128xf32>
    %c417 = arith.constant 417 : index
    %c0_12 = arith.constant 0 : index
    %9 = vector.load %arg1[%c417, %c0_12] : memref<432x128xf32, #tpu.memory_space<vmem>>, vector<1x128xf32>
    %c418 = arith.constant 418 : index
    %c0_13 = arith.constant 0 : index
    %10 = vector.load %arg1[%c418, %c0_13] : memref<432x128xf32, #tpu.memory_space<vmem>>, vector<1x128xf32>
    %c419 = arith.constant 419 : index
    %c0_14 = arith.constant 0 : index
    %11 = vector.load %arg1[%c419, %c0_14] : memref<432x128xf32, #tpu.memory_space<vmem>>, vector<1x128xf32>
    %c420 = arith.constant 420 : index
    %c0_15 = arith.constant 0 : index
    %12 = vector.load %arg1[%c420, %c0_15] : memref<432x128xf32, #tpu.memory_space<vmem>>, vector<1x128xf32>
    %c0_16 = arith.constant 0 : index
    %c0_17 = arith.constant 0 : index
    %13 = vector.load %arg2[%c0_16, %c0_17] : memref<144x256xf32, #tpu.memory_space<vmem>>, vector<128x256xf32>
    %c128 = arith.constant 128 : index
    %c0_18 = arith.constant 0 : index
    %14 = vector.load %arg2[%c128, %c0_18] : memref<144x256xf32, #tpu.memory_space<vmem>>, vector<1x256xf32>
    %c129 = arith.constant 129 : index
    %c0_19 = arith.constant 0 : index
    %15 = vector.load %arg2[%c129, %c0_19] : memref<144x256xf32, #tpu.memory_space<vmem>>, vector<1x256xf32>
    %cst_20 = arith.constant dense<0.000000e+00> : vector<8x128xf32>
    %16 = tpu.matmul %4, %5, %cst_20 {dimension_numbers = #tpu.dot_dimension_numbers<[1], [0], [0], [1], [0, 0, 1, 1], [], []>} : vector<8x32xf32>, vector<32x128xf32>, vector<8x128xf32> -> vector<8x128xf32>
    %cst_21 = arith.constant dense<0.000000e+00> : vector<128xf32>
    %17 = vector.multi_reduction <add>, %16, %cst_21 [0] : vector<8x128xf32> to vector<128xf32>
    %18 = vector.shape_cast %17 : vector<128xf32> to vector<1x128xf32>
    %19 = arith.mulf %16, %16 : vector<8x128xf32>
    %cst_22 = arith.constant dense<0.000000e+00> : vector<128xf32>
    %20 = vector.multi_reduction <add>, %19, %cst_22 [0] : vector<8x128xf32> to vector<128xf32>
    %21 = vector.shape_cast %20 : vector<128xf32> to vector<1x128xf32>
    %cst_23 = arith.constant 1.250000e-01 : f32
    %22 = vector.broadcast %cst_23 : f32 to vector<1x128xf32>
    %23 = arith.mulf %18, %22 : vector<1x128xf32>
    %cst_24 = arith.constant 1.250000e-01 : f32
    %24 = vector.broadcast %cst_24 : f32 to vector<1x128xf32>
    %25 = arith.mulf %21, %24 : vector<1x128xf32>
    %26 = arith.mulf %23, %23 : vector<1x128xf32>
    %27 = arith.subf %25, %26 : vector<1x128xf32>
    %cst_25 = arith.constant 0.000000e+00 : f32
    %28 = vector.broadcast %cst_25 : f32 to vector<1x128xf32>
    %29 = arith.maximumf %27, %28 : vector<1x128xf32>
    %cst_26 = arith.constant 9.99999974E-6 : f32
    %30 = vector.broadcast %cst_26 : f32 to vector<1x128xf32>
    %31 = arith.addf %29, %30 : vector<1x128xf32>
    %32 = math.rsqrt %31 : vector<1x128xf32>
    %33 = arith.mulf %8, %32 : vector<1x128xf32>
    %34 = arith.mulf %23, %33 : vector<1x128xf32>
    %35 = arith.subf %9, %34 : vector<1x128xf32>
    %36 = vector.broadcast %33 : vector<1x128xf32> to vector<8x128xf32>
    %37 = arith.mulf %16, %36 : vector<8x128xf32>
    %38 = vector.broadcast %35 : vector<1x128xf32> to vector<8x128xf32>
    %39 = arith.addf %37, %38 : vector<8x128xf32>
    %cst_27 = arith.constant 0.000000e+00 : f32
    %40 = vector.broadcast %cst_27 : f32 to vector<8x128xf32>
    %41 = arith.maximumf %39, %40 : vector<8x128xf32>
    %cst_28 = arith.constant dense<0.000000e+00> : vector<8x256xf32>
    %42 = tpu.matmul %41, %13, %cst_28 {dimension_numbers = #tpu.dot_dimension_numbers<[1], [0], [0], [1], [0, 0, 1, 1], [], []>} : vector<8x128xf32>, vector<128x256xf32>, vector<8x256xf32> -> vector<8x256xf32>
    %cst_29 = arith.constant dense<0.000000e+00> : vector<256xf32>
    %43 = vector.multi_reduction <add>, %42, %cst_29 [0] : vector<8x256xf32> to vector<256xf32>
    %44 = vector.shape_cast %43 : vector<256xf32> to vector<1x256xf32>
    %45 = arith.mulf %42, %42 : vector<8x256xf32>
    %cst_30 = arith.constant dense<0.000000e+00> : vector<256xf32>
    %46 = vector.multi_reduction <add>, %45, %cst_30 [0] : vector<8x256xf32> to vector<256xf32>
    %47 = vector.shape_cast %46 : vector<256xf32> to vector<1x256xf32>
    %cst_31 = arith.constant 1.250000e-01 : f32
    %48 = vector.broadcast %cst_31 : f32 to vector<1x256xf32>
    %49 = arith.mulf %44, %48 : vector<1x256xf32>
    %cst_32 = arith.constant 1.250000e-01 : f32
    %50 = vector.broadcast %cst_32 : f32 to vector<1x256xf32>
    %51 = arith.mulf %47, %50 : vector<1x256xf32>
    %52 = arith.mulf %49, %49 : vector<1x256xf32>
    %53 = arith.subf %51, %52 : vector<1x256xf32>
    %cst_33 = arith.constant 0.000000e+00 : f32
    %54 = vector.broadcast %cst_33 : f32 to vector<1x256xf32>
    %55 = arith.maximumf %53, %54 : vector<1x256xf32>
    %cst_34 = arith.constant 9.99999974E-6 : f32
    %56 = vector.broadcast %cst_34 : f32 to vector<1x256xf32>
    %57 = arith.addf %55, %56 : vector<1x256xf32>
    %58 = math.rsqrt %57 : vector<1x256xf32>
    %59 = arith.mulf %14, %58 : vector<1x256xf32>
    %60 = arith.mulf %49, %59 : vector<1x256xf32>
    %61 = arith.subf %15, %60 : vector<1x256xf32>
    %62 = vector.broadcast %59 : vector<1x256xf32> to vector<8x256xf32>
    %63 = arith.mulf %42, %62 : vector<8x256xf32>
    %64 = vector.broadcast %61 : vector<1x256xf32> to vector<8x256xf32>
    %65 = arith.addf %63, %64 : vector<8x256xf32>
    %cst_35 = arith.constant 0.000000e+00 : f32
    %66 = vector.broadcast %cst_35 : f32 to vector<8x256xf32>
    %67 = arith.maximumf %65, %66 : vector<8x256xf32>
    %cst_36 = arith.constant dense<0.000000e+00> : vector<8x128xf32>
    %68 = tpu.matmul %67, %6, %cst_36 {dimension_numbers = #tpu.dot_dimension_numbers<[1], [0], [0], [1], [0, 0, 1, 1], [], []>} : vector<8x256xf32>, vector<256x128xf32>, vector<8x128xf32> -> vector<8x128xf32>
    %cst_37 = arith.constant dense<0.000000e+00> : vector<128xf32>
    %69 = vector.multi_reduction <add>, %68, %cst_37 [0] : vector<8x128xf32> to vector<128xf32>
    %70 = vector.shape_cast %69 : vector<128xf32> to vector<1x128xf32>
    %71 = arith.mulf %68, %68 : vector<8x128xf32>
    %cst_38 = arith.constant dense<0.000000e+00> : vector<128xf32>
    %72 = vector.multi_reduction <add>, %71, %cst_38 [0] : vector<8x128xf32> to vector<128xf32>
    %73 = vector.shape_cast %72 : vector<128xf32> to vector<1x128xf32>
    %cst_39 = arith.constant 1.250000e-01 : f32
    %74 = vector.broadcast %cst_39 : f32 to vector<1x128xf32>
    %75 = arith.mulf %70, %74 : vector<1x128xf32>
    %cst_40 = arith.constant 1.250000e-01 : f32
    %76 = vector.broadcast %cst_40 : f32 to vector<1x128xf32>
    %77 = arith.mulf %73, %76 : vector<1x128xf32>
    %78 = arith.mulf %75, %75 : vector<1x128xf32>
    %79 = arith.subf %77, %78 : vector<1x128xf32>
    %cst_41 = arith.constant 0.000000e+00 : f32
    %80 = vector.broadcast %cst_41 : f32 to vector<1x128xf32>
    %81 = arith.maximumf %79, %80 : vector<1x128xf32>
    %cst_42 = arith.constant 9.99999974E-6 : f32
    %82 = vector.broadcast %cst_42 : f32 to vector<1x128xf32>
    %83 = arith.addf %81, %82 : vector<1x128xf32>
    %84 = math.rsqrt %83 : vector<1x128xf32>
    %85 = arith.mulf %10, %84 : vector<1x128xf32>
    %86 = arith.mulf %75, %85 : vector<1x128xf32>
    %87 = arith.subf %11, %86 : vector<1x128xf32>
    %88 = vector.broadcast %85 : vector<1x128xf32> to vector<8x128xf32>
    %89 = arith.mulf %68, %88 : vector<8x128xf32>
    %90 = vector.broadcast %87 : vector<1x128xf32> to vector<8x128xf32>
    %91 = arith.addf %89, %90 : vector<8x128xf32>
    %cst_43 = arith.constant 0.000000e+00 : f32
    %92 = vector.broadcast %cst_43 : f32 to vector<8x128xf32>
    %93 = arith.maximumf %91, %92 : vector<8x128xf32>
    %cst_44 = arith.constant dense<0.000000e+00> : vector<8x128xf32>
    %94 = tpu.matmul %93, %7, %cst_44 {dimension_numbers = #tpu.dot_dimension_numbers<[1], [0], [0], [1], [0, 0, 1, 1], [], []>} : vector<8x128xf32>, vector<128x128xf32>, vector<8x128xf32> -> vector<8x128xf32>
    %95 = vector.broadcast %12 : vector<1x128xf32> to vector<8x128xf32>
    %96 = arith.addf %94, %95 : vector<8x128xf32>
    %c0_45 = arith.constant 0 : index
    %c0_46 = arith.constant 0 : index
    %97 = vector.load %arg3[%c0_45, %c0_46] : memref<8x128xf32, #tpu.memory_space<vmem>>, vector<8x128xf32>
    tpu.vector_store %arg3[%c0_45, %c0_46], %96 {strides = array<i32>} : memref<8x128xf32, #tpu.memory_space<vmem>>, vector<8x128xf32>,
    return
  }
}

</mosaic_0001>

<bundles_post_ra>
// kernel: tpu_custom_call.1
= control target key start
LH: loop header
LB: loop body
LE: loop exit
PB: predicated region body
PF: predicated region fallthrough
CT: control target
= control target key end

     0   :  { %8 = vsyncpa [#allocation4], 0  ;;  %s935_s0 = inlined_call_operand.hbm [shape: f32[8,30], index: 0, kind: input, shape index: {}]   ;;  %s936_s1 = inlined_call_operand.hbm [shape: f32[432,128], index: 1, kind: input, shape index: {}]   ;;  %s937_s2 = inlined_call_operand.hbm [shape: f32[144,256], index: 2, kind: input, shape index: {}]   ;;  %s938_s3 = inlined_call_operand.hbm [shape: f32[8,128], index: 3, kind: output, shape index: {}]  }
   0x1   :  { %9 = vsyncpa [#allocation7], 0 }
   0x2   :  { %10 = vsyncpa [#allocation5], 0  ;;  %s844_s12 = smov [#allocation6]  }
   0x3   :  { %s26_s13 = sshll.u32 %s844_s12, 4  ;;  %s27_s13 = int_to_ptr.vmem [resolvable:$true] %s26_s13 }
   0x4   :  { %s766_s14 = scalar_lea.vmem %s27_s13, 6912  ;;  %p771_p1 = scmp.lt.s32.totalorder %s27_s13, %s27_s13 }
   0x5   :  { %p767_p0 = scmp.ne.s32.totalorder %s27_s13, %s766_s14  ;;  %p772_p2 = scmp.lt.s32.totalorder %s766_s14, %s766_s14 }
   0x7   :  { %p773_p3 = por %p772_p2, %p771_p1 }
   0x9   :  { %p774_p4 = pnand %p773_p3, %p767_p0 }
   0xb   :  { %777 = shalt.err (!%p774_p4)
}
   0xc   :  { %s845_s15 = smov 128   ;;  %s846_s16 = smov 8  }
   0xd   :  { %32 = dma.hbm_to_vmem [thread:$0]  %s936_s1, 6912, %s27_s13, [#allocation7], %s845_s15, %s845_s15, %s846_s16  }
   0xe   :  { %s847_s19 = smov [#allocation3]   ;;  %s848_s21 = smov [#allocation8]  }
   0xf   :  { %s17_s20 = sshll.u32 %s847_s19, 4  ;;  %s38_s22 = sshll.u32 %s848_s21, 4  ;;  %s18_s20 = int_to_ptr.vmem [resolvable:$true] %s17_s20  ;;  %s39_s22 = int_to_ptr.vmem [resolvable:$true] %s38_s22 }
  0x10   :  { %s786_s23 = scalar_lea.vmem %s18_s20, 128  ;;  %p791_p6 = scmp.lt.s32.totalorder %s18_s20, %s18_s20 }
  0x11   :  { %p787_p5 = scmp.ne.s32.totalorder %s18_s20, %s786_s23  ;;  %p792_p7 = scmp.lt.s32.totalorder %s786_s23, %s786_s23 }
  0x13   :  { %p793_p8 = por %p792_p7, %p791_p6 }
  0x15   :  { %p794_p9 = pnand %p793_p8, %p787_p5 }
  0x17   :  { %797 = shalt.err (!%p794_p9)
}
  0x18   :  { %20 = dma.hbm_to_vmem [thread:$0]  %s935_s0, 128, %s18_s20, [#allocation4]  }
  0x19   :  { %s806_s26 = scalar_lea.vmem %s39_s22, 4608  ;;  %p811_p11 = scmp.lt.s32.totalorder %s39_s22, %s39_s22 }
  0x1a   :  { %p807_p10 = scmp.ne.s32.totalorder %s39_s22, %s806_s26  ;;  %p812_p12 = scmp.lt.s32.totalorder %s806_s26, %s806_s26 }
  0x1c   :  { %p813_p13 = por %p812_p12, %p811_p11 }
  0x1e   :  { %p814_p0 = pnand %p813_p13, %p807_p10 }
  0x20   :  { %817 = shalt.err (!%p814_p0)
}
  0x21   :  { %s849_s1 = smov 256   ;;  %s850_s27 = smov 16  }
  0x22   :  { %44 = dma.hbm_to_vmem [thread:$0]  %s937_s2, 4608, %s39_s22, [#allocation7], %s849_s1, %s849_s1, %s850_s27  }
  0x23   :  { %838 = dma.done.wait [#allocation4], 128  }
  0x24   :  { %839 = vsyncadd [#allocation4], 4294967168 }
  0x25   :  { %840 = dma.done.wait [#allocation7], 11520  }
  0x26   :  { %841 = vsyncadd [#allocation7], 4294955776  ;;  %vm54_vm0 = vcmask 261120   ;;  %v851_v0 = vmov 0.0   ;;  %vm852_vm1 = vmmov 0   ;;  %vm57_vm2 = vcmask 244736  }
  0x27   :  { %693 = vmatprep.subr.mxu0 %v851_v0  ;;  %701 = vmatprep.mubr.msk.f32.mxu0 %vm852_vm1, %v851_v0  ;;  %55 = vst.msk [vmem:[#allocation2] sm:$0xff] %vm54_vm0, %v851_v0  ;;  %v63_v1 = vld [vmem:[#allocation6 + $0x18] sm:$0xff]  ;;  %v62_v2 = vld [vmem:[#allocation6 + $0x10] sm:$0xff]  ;;  %v61_v4 = vld [vmem:[#allocation6 + $0x8] sm:$0xff]  ;;  %v249_v60 = vlaneseq  ;;  %s854_s0 = smov [#allocation9]  }
  0x28   :  { %324 = vmatprep.mubr.f32.mxu1 %v851_v0  ;;  %694 = vmatpush3.msra.mxu0 %v63_v1  ;;  %v56_v3 = vld [vmem:[#allocation3] sm:$0xff]  ;;  %v60_v5 = vld [vmem:[#allocation6] sm:$0xff]  ;;  %v148_v7 = vld [vmem:[#allocation8 + $0xf8] sm:$0xff]  ;;  %s624_s2 = sshll.u32 %s854_s0, 4  ;;  %s625_s2 = int_to_ptr.vmem [resolvable:$true] %s624_s2 }
  0x29   :  { %695 = vmatprep.subr.mxu0 %v851_v0  ;;  %58 = vst.msk [vmem:[#allocation2] sm:$0xff] %vm57_vm2, %v56_v3  ;;  %260 = vmatprep.subr.mxu1 %v148_v7  ;;  %v147_v8 = vld [vmem:[#allocation8 + $0xf0] sm:$0xff]  ;;  %v146_v9 = vld [vmem:[#allocation8 + $0xe8] sm:$0xff]  ;;  %v145_v10 = vld [vmem:[#allocation8 + $0xe0] sm:$0xff]  ;;  %v895_v61 = vshrl.u32 %v249_v60, 7  ;;  %s818_s30 = scalar_lea.vmem %s625_s2, 128  ;;  %p823_p2 = scmp.lt.s32.totalorder %s625_s2, %s625_s2 }
  0x2a   :  { %696 = vmatpush3.msra.mxu0 %v62_v2  ;;  %261 = vmatpush1.msra.mxu1 %v147_v8  ;;  %v144_v11 = vld [vmem:[#allocation8 + $0xd8] sm:$0xff]  ;;  %v143_v12 = vld [vmem:[#allocation8 + $0xd0] sm:$0xff]  ;;  %v142_v13 = vld [vmem:[#allocation8 + $0xc8] sm:$0xff]  ;;  %p819_p1 = scmp.ne.s32.totalorder %s625_s2, %s818_s30  ;;  %p824_p3 = scmp.lt.s32.totalorder %s818_s30, %s818_s30 }
  0x2b   :  { %697 = vmatprep.subr.mxu0 %v851_v0  ;;  %262 = vmatprep.subr.mxu1 %v146_v9  ;;  %v141_v14 = vld [vmem:[#allocation8 + $0xc0] sm:$0xff]  ;;  %v140_v15 = vld [vmem:[#allocation8 + $0xb8] sm:$0xff]  ;;  %v139_v16 = vld [vmem:[#allocation8 + $0xb0] sm:$0xff]  ;;  %v898_v63 = vsub.s32 0, %v895_v61 }
  0x2c   :  { %698 = vmatpush3.msra.mxu0 %v61_v4  ;;  %263 = vmatpush1.msra.mxu1 %v145_v10  ;;  %v138_v17 = vld [vmem:[#allocation8 + $0xa8] sm:$0xff]  ;;  %v137_v18 = vld [vmem:[#allocation8 + $0xa0] sm:$0xff]  ;;  %v136_v19 = vld [vmem:[#allocation8 + $0x98] sm:$0xff]  ;;  %p825_p4 = por %p824_p3, %p823_p2 }
  0x2d   :  { %699 = vmatprep.subr.mxu0 %v851_v0  ;;  %264 = vmatprep.subr.mxu1 %v144_v11  ;;  %v135_v20 = vld [vmem:[#allocation8 + $0x90] sm:$0xff]  ;;  %v134_v21 = vld [vmem:[#allocation8 + $0x88] sm:$0xff]  ;;  %v133_v22 = vld [vmem:[#allocation8 + $0x80] sm:$0xff] }
  0x2e   :  { %700 = vmatpush3.msra.mxu0 %v60_v5  ;;  %265 = vmatpush1.msra.mxu1 %v143_v12  ;;  %v132_v23 = vld [vmem:[#allocation8 + $0x78] sm:$0xff]  ;;  %v131_v24 = vld [vmem:[#allocation8 + $0x70] sm:$0xff]  ;;  %v130_v25 = vld [vmem:[#allocation8 + $0x68] sm:$0xff]  ;;  %p826_p5 = pnand %p825_p4, %p819_p1 }
  0x2f   :  { %266 = vmatprep.subr.mxu1 %v142_v13  ;;  %v129_v26 = vld [vmem:[#allocation8 + $0x60] sm:$0xff]  ;;  %v128_v27 = vld [vmem:[#allocation8 + $0x58] sm:$0xff]  ;;  %v127_v28 = vld [vmem:[#allocation8 + $0x50] sm:$0xff] }
  0x30   :  { %v59_v6 = vld [vmem:[#allocation2] sm:$0xff]  ;;  %267 = vmatpush1.msra.mxu1 %v141_v14  ;;  %v126_v29 = vld [vmem:[#allocation8 + $0x48] sm:$0xff]  ;;  %v124_v31 = vld [vmem:[#allocation8 + $0x38] sm:$0xff] }
  0x31   :  { %702 = vmatmul.mubr.msk.f32.vlgmr.msra.gmra.mxu0 %vm54_vm0, %v59_v6  ;;  %268 = vmatprep.subr.mxu1 %v140_v15  ;;  %v125_v30 = vld [vmem:[#allocation8 + $0x40] sm:$0xff]  ;;  %v123_v32 = vld [vmem:[#allocation8 + $0x30] sm:$0xff]  ;;  %v122_v33 = vld [vmem:[#allocation8 + $0x28] sm:$0xff] }
  0x32   :  { %269 = vmatpush1.msra.mxu1 %v139_v16  ;;  %v121_v34 = vld [vmem:[#allocation8 + $0x20] sm:$0xff]  ;;  %v120_v35 = vld [vmem:[#allocation8 + $0x18] sm:$0xff]  ;;  %v119_v36 = vld [vmem:[#allocation8 + $0x10] sm:$0xff] }
  0x33   :  { %270 = vmatprep.subr.mxu1 %v138_v17  ;;  %v118_v37 = vld [vmem:[#allocation8 + $0x8] sm:$0xff]  ;;  %v117_v38 = vld [vmem:[#allocation8] sm:$0xff]  ;;  %v112_v62 = vld [vmem:[#allocation6 + $0x1a0] sm:$0x1] }
  0x34   :  { %271 = vmatpush1.msra.mxu1 %v137_v18  ;;  %v113_v3 = vld [vmem:[#allocation6 + $0x1a1] sm:$0x1]  ;;  %v95_v11 = vld [vmem:[#allocation6 + $0x118] sm:$0xff]  ;;  %v94_v13 = vld [vmem:[#allocation6 + $0x110] sm:$0xff] }
  0x35   :  { %272 = vmatprep.subr.mxu1 %v136_v19  ;;  %641 = vmatprep.subr.mxu0 %v95_v11  ;;  %v79_v12 = vld [vmem:[#allocation6 + $0x98] sm:$0xff]  ;;  %v78_v14 = vld [vmem:[#allocation6 + $0x90] sm:$0xff]  ;;  %v93_v15 = vld [vmem:[#allocation6 + $0x108] sm:$0xff] }
  0x36   :  { %273 = vmatpush1.msra.mxu1 %v135_v20  ;;  %642 = vmatpush3.msra.mxu0 %v79_v12  ;;  %v77_v16 = vld [vmem:[#allocation6 + $0x88] sm:$0xff]  ;;  %v92_v17 = vld [vmem:[#allocation6 + $0x100] sm:$0xff]  ;;  %v91_v19 = vld [vmem:[#allocation6 + $0xf8] sm:$0xff] }
  0x37   :  { %274 = vmatprep.subr.mxu1 %v134_v21  ;;  %643 = vmatprep.subr.mxu0 %v94_v13  ;;  %v76_v18 = vld [vmem:[#allocation6 + $0x80] sm:$0xff]  ;;  %v75_v20 = vld [vmem:[#allocation6 + $0x78] sm:$0xff]  ;;  %v90_v21 = vld [vmem:[#allocation6 + $0xf0] sm:$0xff] }
  0x38   :  { %275 = vmatpush1.msra.mxu1 %v133_v22  ;;  %644 = vmatpush3.msra.mxu0 %v78_v14  ;;  %v74_v22 = vld [vmem:[#allocation6 + $0x70] sm:$0xff] }
  0x39   :  { %276 = vmatprep.subr.mxu1 %v132_v23  ;;  %645 = vmatprep.subr.mxu0 %v93_v15  ;;  %v89_v23 = vld [vmem:[#allocation6 + $0xe8] sm:$0xff] }
  0x3a   :  { %277 = vmatpush1.msra.mxu1 %v131_v24  ;;  %646 = vmatpush3.msra.mxu0 %v77_v16  ;;  %v73_v24 = vld [vmem:[#allocation6 + $0x68] sm:$0xff] }
  0x3b   :  { %278 = vmatprep.subr.mxu1 %v130_v25  ;;  %647 = vmatprep.subr.mxu0 %v92_v17  ;;  %v88_v25 = vld [vmem:[#allocation6 + $0xe0] sm:$0xff] }
  0x3c   :  { %279 = vmatpush1.msra.mxu1 %v129_v26  ;;  %648 = vmatpush3.msra.mxu0 %v76_v18  ;;  %v72_v26 = vld [vmem:[#allocation6 + $0x60] sm:$0xff] }
  0x3d   :  { %280 = vmatprep.subr.mxu1 %v128_v27  ;;  %649 = vmatprep.subr.mxu0 %v91_v19  ;;  %v87_v27 = vld [vmem:[#allocation6 + $0xd8] sm:$0xff] }
  0x3e   :  { %281 = vmatpush1.msra.mxu1 %v127_v28  ;;  %650 = vmatpush3.msra.mxu0 %v75_v20  ;;  %v71_v28 = vld [vmem:[#allocation6 + $0x58] sm:$0xff] }
  0x3f   :  { %282 = vmatprep.subr.mxu1 %v126_v29  ;;  %651 = vmatprep.subr.mxu0 %v90_v21  ;;  %v86_v29 = vld [vmem:[#allocation6 + $0xd0] sm:$0xff] }
  0x40   :  { %283 = vmatpush1.msra.mxu1 %v125_v30  ;;  %652 = vmatpush3.msra.mxu0 %v74_v22  ;;  %v70_v30 = vld [vmem:[#allocation6 + $0x50] sm:$0xff]  ;;  %v853_v22 = vmov 1966171168  }
  0x41   :  { %284 = vmatprep.subr.mxu1 %v124_v31  ;;  %653 = vmatprep.subr.mxu0 %v89_v23  ;;  %v85_v31 = vld [vmem:[#allocation6 + $0xc8] sm:$0xff]  ;;  %v375_v23 = vunpack.c.l.s4 %v853_v22 }
  0x42   :  { %285 = vmatpush1.msra.mxu1 %v123_v32  ;;  %654 = vmatpush3.msra.mxu0 %v73_v24  ;;  %v69_v32 = vld [vmem:[#allocation6 + $0x48] sm:$0xff] }
  0x43   :  { %286 = vmatprep.subr.mxu1 %v122_v33  ;;  %655 = vmatprep.subr.mxu0 %v88_v25  ;;  %v84_v33 = vld [vmem:[#allocation6 + $0xc0] sm:$0xff]  ;;  %v376_v24 = vunpack.c.0.s8 %v375_v23 }
  0x44   :  { %287 = vmatpush1.msra.mxu1 %v121_v34  ;;  %656 = vmatpush3.msra.mxu0 %v72_v26  ;;  %v68_v34 = vld [vmem:[#allocation6 + $0x40] sm:$0xff] }
  0x45   :  { %288 = vmatprep.subr.mxu1 %v120_v35  ;;  %657 = vmatprep.subr.mxu0 %v87_v27  ;;  %v83_v35 = vld [vmem:[#allocation6 + $0xb8] sm:$0xff]  ;;  %v379_v26 = vsub.s32 %v376_v24, %v895_v61 }
  0x46   :  { %289 = vmatpush1.msra.mxu1 %v119_v36  ;;  %658 = vmatpush3.msra.mxu0 %v71_v28  ;;  %v67_v36 = vld [vmem:[#allocation6 + $0x38] sm:$0xff] }
  0x47   :  { %290 = vmatprep.subr.mxu1 %v118_v37  ;;  %659 = vmatprep.subr.mxu0 %v86_v29  ;;  %v82_v37 = vld [vmem:[#allocation6 + $0xb0] sm:$0xff] }
  0x48   :  { %291 = vmatpush1.msra.mxu1 %v117_v38  ;;  %660 = vmatpush3.msra.mxu0 %v70_v30  ;;  %v66_v38 = vld [vmem:[#allocation6 + $0x30] sm:$0xff] }
  0x49   :  { %704 = vmatprep.subr.mxu1 %v851_v0  ;;  %661 = vmatprep.subr.mxu0 %v85_v31  ;;  %v150_v30 = vld [vmem:[#allocation8 + $0x100] ss:$8 sm:$0x3] }
  0x4a   :  { %662 = vmatpush3.msra.mxu0 %v69_v32  ;;  %v397_v32 = vsub.s32 1, %v895_v61 }
  0x4b   :  { %663 = vmatprep.subr.mxu0 %v84_v33 }
  0x4c   :  { %664 = vmatpush3.msra.mxu0 %v68_v34 }
  0x4d   :  { %665 = vmatprep.subr.mxu0 %v83_v35 }
  0x4e   :  { %666 = vmatpush3.msra.mxu0 %v67_v36 }
  0x4f   :  { %667 = vmatprep.subr.mxu0 %v82_v37 }
  0x50   :  { %668 = vmatpush3.msra.mxu0 %v66_v38 }
  0xf1   :  { %v222_v39 = vpop.f32.mrf.mxu0 }
  0xf2   :  { %v226_v40 = vrot.slane %v222_v39, 4  ;;  %v232_v41 = vmul.f32 %v222_v39, %v222_v39 }
  0xf3   :  { %v703_v42 = vpop.f32.mrf.mxu0 }
  0xf4   :  { %v227_v43 = vadd.f32 %v226_v40, %v222_v39  ;;  %v233_v44 = vrot.slane %v232_v41, 4  ;;  %v65_v40 = vld [vmem:[#allocation6 + $0x28] sm:$0xff]  ;;  %v64_v42 = vld [vmem:[#allocation6 + $0x20] sm:$0xff] }
  0xf6   :  { %v228_v45 = vrot.slane %v227_v43, 2  ;;  %v234_v46 = vadd.f32 %v233_v44, %v232_v41  ;;  %v80_v41 = vld [vmem:[#allocation6 + $0xa0] sm:$0xff] }
  0xf8   :  { %v229_v47 = vadd.f32 %v228_v45, %v227_v43  ;;  %v235_v48 = vrot.slane %v234_v46, 2 }
  0xfa   :  { %v230_v49 = vrot.slane %v229_v47, 1  ;;  %v236_v50 = vadd.f32 %v235_v48, %v234_v46 }
  0xfc   :  { %v231_v51 = vadd.f32 %v230_v49, %v229_v47  ;;  %v237_v52 = vrot.slane %v236_v50, 1 }
  0xfe   :  { %v238_v53 = vadd.f32 %v237_v52, %v236_v50  ;;  %v239_v54 = vmul.f32 0.125, %v231_v51 }
 0x100   :  { %v240_v55 = vmul.f32 0.125, %v238_v53  ;;  %v241_v56 = vmul.f32 %v239_v54, %v239_v54 }
 0x102   :  { %v242_v57 = vsub.f32 %v240_v55, %v241_v56 }
 0x104   :  { %v243_v58 = vmax.f32 %v242_v57, 0.0 }
 0x106   :  { %v244_v59 = vadd.f32 1e-05, %v243_v58 }
 0x108   :  { %750 = vrsqrt.f32 %v244_v59 }
 0x115   :  { %v751_v1 = vpop.eup %750 }
 0x116   :  { %v246_v2 = vmul.f32 %v751_v1, %v112_v62 }
 0x118   :  { %v252_v4 = vrot.slane %v246_v2, %v898_v63  ;;  %v247_v5 = vmul.f32 %v246_v2, %v239_v54 }
 0x11a   :  { %v248_v6 = vsub.f32 %v113_v3, %v247_v5  ;;  %v253_v7 = vmul.f32 %v252_v4, %v222_v39  ;;  %v81_v39 = vld [vmem:[#allocation6 + $0xa8] sm:$0xff] }
 0x11b   :  { %669 = vmatprep.subr.mxu0 %v81_v39 }
 0x11c   :  { %v257_v8 = vrot.slane %v248_v6, %v898_v63  ;;  %670 = vmatpush3.msra.mxu0 %v65_v40  ;;  %v152_v40 = vld [vmem:[#allocation8 + $0x101] ss:$8 sm:$0x3] }
 0x11d   :  { %671 = vmatprep.subr.mxu0 %v80_v41 }
 0x11e   :  { %v258_v9 = vadd.f32 %v257_v8, %v253_v7  ;;  %672 = vmatpush3.msra.mxu0 %v64_v42 }
 0x120   :  { %v259_v10 = vmax.f32 %v258_v9, 0.0 }
 0x122   :  { %325 = vmatmul.mubr.f32.vlgmr.msra.gmra.mxu1 %v259_v10 }
 0x123   :  { %736 = vmatprep.mubr.msk.f32.mxu1 %vm852_vm1, %v851_v0 }
 0x1e2   :  { %v904_v43 = vpop.f32.mrf.mxu1 }
 0x1e3   :  { %v331_v44 = vrot.slane %v904_v43, 4  ;;  %v343_v45 = vmul.f32 %v904_v43, %v904_v43 }
 0x1e4   :  { %v328_v46 = vpop.f32.mrf.mxu1 }
 0x1e5   :  { %v332_v47 = vadd.f32 %v331_v44, %v904_v43  ;;  %v345_v48 = vrot.slane %v343_v45, 4  ;;  %v337_v49 = vrot.slane %v328_v46, 4  ;;  %v344_v50 = vmul.f32 %v328_v46, %v328_v46 }
 0x1e7   :  { %v333_v51 = vrot.slane %v332_v47, 2  ;;  %v346_v52 = vadd.f32 %v345_v48, %v343_v45  ;;  %v338_v53 = vadd.f32 %v337_v49, %v328_v46  ;;  %v351_v54 = vrot.slane %v344_v50, 4 }
 0x1e9   :  { %v334_v55 = vadd.f32 %v333_v51, %v332_v47  ;;  %v347_v56 = vrot.slane %v346_v52, 2  ;;  %v339_v57 = vrot.slane %v338_v53, 2  ;;  %v352_v58 = vadd.f32 %v351_v54, %v344_v50  ;;  %v107_v54 = vld [vmem:[#allocation6 + $0x178] sm:$0xff] }
 0x1eb   :  { %v335_v59 = vrot.slane %v334_v55, 1  ;;  %v348_v60 = vadd.f32 %v347_v56, %v346_v52  ;;  %v340_v62 = vadd.f32 %v339_v57, %v338_v53  ;;  %v353_v1 = vrot.slane %v352_v58, 2  ;;  %v111_v52 = vld [vmem:[#allocation6 + $0x198] sm:$0xff]  ;;  %v110_v53 = vld [vmem:[#allocation6 + $0x190] sm:$0xff]  ;;  %v105_v56 = vld [vmem:[#allocation6 + $0x168] sm:$0xff] }
 0x1ec   :  { %705 = vmatpush3.msra.mxu1 %v111_v52  ;;  %v104_v57 = vld [vmem:[#allocation6 + $0x160] sm:$0xff] }
 0x1ed   :  { %v336_v2 = vadd.f32 %v335_v59, %v334_v55  ;;  %v349_v3 = vrot.slane %v348_v60, 1  ;;  %v341_v4 = vrot.slane %v340_v62, 1  ;;  %v354_v5 = vadd.f32 %v353_v1, %v352_v58  ;;  %706 = vmatprep.subr.mxu1 %v851_v0  ;;  %v106_v55 = vld [vmem:[#allocation6 + $0x170] sm:$0xff]  ;;  %v103_v58 = vld [vmem:[#allocation6 + $0x158] sm:$0xff] }
 0x1ee   :  { %707 = vmatpush3.msra.mxu1 %v110_v53  ;;  %v102_v59 = vld [vmem:[#allocation6 + $0x150] sm:$0xff]  ;;  %v99_v1 = vld [vmem:[#allocation6 + $0x138] sm:$0xff] }
 0x1ef   :  { %v350_v6 = vadd.f32 %v349_v3, %v348_v60  ;;  %v357_v7 = vmul.f32 0.125, %v336_v2  ;;  %v342_v8 = vadd.f32 %v341_v4, %v340_v62  ;;  %v355_v9 = vrot.slane %v354_v5, 1  ;;  %708 = vmatprep.subr.mxu1 %v851_v0  ;;  %v101_v60 = vld [vmem:[#allocation6 + $0x148] sm:$0xff]  ;;  %v100_v62 = vld [vmem:[#allocation6 + $0x140] sm:$0xff]  ;;  %v98_v2 = vld [vmem:[#allocation6 + $0x130] sm:$0xff] }
 0x1f0   :  { %v97_v3 = vld [vmem:[#allocation6 + $0x128] sm:$0xff]  ;;  %v96_v4 = vld [vmem:[#allocation6 + $0x120] sm:$0xff] }
 0x1f1   :  { %v359_v10 = vmul.f32 0.125, %v350_v6  ;;  %v361_v11 = vmul.f32 %v357_v7, %v357_v7  ;;  %v356_v12 = vadd.f32 %v355_v9, %v354_v5  ;;  %v358_v13 = vmul.f32 0.125, %v342_v8 }
 0x1f3   :  { %v363_v14 = vsub.f32 %v359_v10, %v361_v11  ;;  %v360_v15 = vmul.f32 0.125, %v356_v12  ;;  %v362_v16 = vmul.f32 %v358_v13, %v358_v13 }
 0x1f5   :  { %v365_v17 = vmax.f32 %v363_v14, 0.0  ;;  %v364_v18 = vsub.f32 %v360_v15, %v362_v16 }
 0x1f7   :  { %v367_v19 = vadd.f32 1e-05, %v365_v17  ;;  %v366_v20 = vmax.f32 %v364_v18, 0.0 }
 0x1f9   :  { %v368_v21 = vadd.f32 1e-05, %v366_v20  ;;  %752 = vrsqrt.f32 %v367_v19 }
 0x1fb   :  { %754 = vrsqrt.f32 %v368_v21 }
 0x206   :  { %v753_v25 = vpop.eup %752 }
 0x208   :  { %v755_v27 = vpop.eup %754 }
 0x209   :  { %v373_v28 = vcombine.low %v753_v25, %v755_v27 }
 0x20b   :  { %v380_v29 = vrot.slane %v373_v28, %v379_v26 }
 0x20d   :  { %v387_v31 = vrot.slane %v380_v29, %v379_v26  ;;  %v115_v29 = vld [vmem:[#allocation6 + $0x1a3] sm:$0x1] }
 0x20f   :  { %v389_v33 = vmul.f32 %v387_v31, %v150_v30 }
 0x211   :  { %v394_v34 = vrot.slane %v389_v33, %v898_v63  ;;  %v398_v35 = vrot.slane %v389_v33, %v397_v32 }
 0x213   :  { %v401_v36 = vmul.f32 %v394_v34, %v357_v7  ;;  %v402_v37 = vmul.f32 %v398_v35, %v358_v13  ;;  %v423_v44 = vmul.f32 %v398_v35, %v328_v46  ;;  %v422_v47 = vmul.f32 %v394_v34, %v904_v43  ;;  %v109_v46 = vld [vmem:[#allocation6 + $0x188] sm:$0xff]  ;;  %v108_v43 = vld [vmem:[#allocation6 + $0x180] sm:$0xff] }
 0x214   :  { %709 = vmatpush3.msra.mxu1 %v109_v46 }
 0x215   :  { %v405_v38 = vcombine.low %v401_v36, %v402_v37  ;;  %710 = vmatprep.subr.mxu1 %v851_v0  ;;  %v635_v37 = vld [vmem:[#allocation6 + $0x1a4] ss:$0 sm:$0xff] }
 0x216   :  { %711 = vmatpush3.msra.mxu1 %v108_v43 }
 0x217   :  { %v412_v39 = vrot.slane %v405_v38, %v379_v26  ;;  %712 = vmatprep.subr.mxu1 %v851_v0 }
 0x218   :  { %713 = vmatpush3.msra.mxu1 %v107_v54 }
 0x219   :  { %v419_v41 = vrot.slane %v412_v39, %v379_v26  ;;  %714 = vmatprep.subr.mxu1 %v851_v0  ;;  %v114_v26 = vld [vmem:[#allocation6 + $0x1a2] sm:$0x1] }
 0x21a   :  { %715 = vmatpush3.msra.mxu1 %v106_v55 }
 0x21b   :  { %v421_v42 = vsub.f32 %v152_v40, %v419_v41  ;;  %716 = vmatprep.subr.mxu1 %v851_v0 }
 0x21c   :  { %717 = vmatpush3.msra.mxu1 %v105_v56 }
 0x21d   :  { %v432_v45 = vrot.slane %v421_v42, %v397_v32  ;;  %v428_v48 = vrot.slane %v421_v42, %v898_v63  ;;  %718 = vmatprep.subr.mxu1 %v851_v0 }
 0x21e   :  { %719 = vmatpush3.msra.mxu1 %v104_v57 }
 0x21f   :  { %v436_v49 = vadd.f32 %v432_v45, %v423_v44  ;;  %v435_v50 = vadd.f32 %v428_v48, %v422_v47  ;;  %720 = vmatprep.subr.mxu1 %v851_v0 }
 0x220   :  { %721 = vmatpush3.msra.mxu1 %v103_v58 }
 0x221   :  { %v438_v61 = vmax.f32 %v436_v49, 0.0  ;;  %v437_v51 = vmax.f32 %v435_v50, 0.0  ;;  %722 = vmatprep.subr.mxu1 %v851_v0 }
 0x222   :  { %723 = vmatpush3.msra.mxu1 %v102_v59 }
 0x223   :  { %503 = vmatprep.mubr.f32.mxu0 %v438_v61  ;;  %724 = vmatprep.subr.mxu1 %v851_v0 }
 0x224   :  { %504 = vmatmul.mubr.f32.vlgmr.msra.gmra.mxu0 %v437_v51  ;;  %725 = vmatpush3.msra.mxu1 %v101_v60 }
 0x225   :  { %726 = vmatprep.subr.mxu1 %v851_v0 }
 0x226   :  { %727 = vmatpush3.msra.mxu1 %v100_v62 }
 0x227   :  { %728 = vmatprep.subr.mxu1 %v851_v0 }
 0x228   :  { %729 = vmatpush3.msra.mxu1 %v99_v1 }
 0x229   :  { %730 = vmatprep.subr.mxu1 %v851_v0 }
 0x22a   :  { %731 = vmatpush3.msra.mxu1 %v98_v2 }
 0x22b   :  { %732 = vmatprep.subr.mxu1 %v851_v0 }
 0x22c   :  { %733 = vmatpush3.msra.mxu1 %v97_v3 }
 0x22d   :  { %734 = vmatprep.subr.mxu1 %v851_v0 }
 0x22e   :  { %735 = vmatpush3.msra.mxu1 %v96_v4 }
 0x2e4   :  { %v673_v5 = vpop.f32.mrf.mxu0 }
 0x2e6   :  { %v674_v6 = vpop.f32.mrf.mxu0 }
 0x2e7   :  { %v675_v7 = vadd.f32 %v674_v6, %v673_v5 }
 0x2e9   :  { %v509_v8 = vrot.slane %v675_v7, 4  ;;  %v515_v9 = vmul.f32 %v675_v7, %v675_v7 }
 0x2eb   :  { %v510_v10 = vadd.f32 %v675_v7, %v509_v8  ;;  %v516_v11 = vrot.slane %v515_v9, 4 }
 0x2ed   :  { %v511_v12 = vrot.slane %v510_v10, 2  ;;  %v517_v13 = vadd.f32 %v516_v11, %v515_v9 }
 0x2ef   :  { %v512_v14 = vadd.f32 %v511_v12, %v510_v10  ;;  %v518_v15 = vrot.slane %v517_v13, 2 }
 0x2f1   :  { %v513_v16 = vrot.slane %v512_v14, 1  ;;  %v519_v17 = vadd.f32 %v518_v15, %v517_v13 }
 0x2f3   :  { %v514_v18 = vadd.f32 %v513_v16, %v512_v14  ;;  %v520_v19 = vrot.slane %v519_v17, 1 }
 0x2f5   :  { %v521_v20 = vadd.f32 %v520_v19, %v519_v17  ;;  %v522_v21 = vmul.f32 0.125, %v514_v18 }
 0x2f7   :  { %v523_v22 = vmul.f32 0.125, %v521_v20  ;;  %v524_v0 = vmul.f32 %v522_v21, %v522_v21 }
 0x2f9   :  { %v525_v23 = vsub.f32 %v523_v22, %v524_v0 }
 0x2fb   :  { %v526_v24 = vmax.f32 %v525_v23, 0.0 }
 0x2fd   :  { %v527_v25 = vadd.f32 1e-05, %v526_v24 }
 0x2ff   :  { %756 = vrsqrt.f32 %v527_v25 }
 0x30c   :  { %v757_v27 = vpop.eup %756 }
 0x30d   :  { %v529_v28 = vmul.f32 %v757_v27, %v114_v26 }
 0x30f   :  { %v535_v30 = vrot.slane %v529_v28, %v898_v63  ;;  %v530_v31 = vmul.f32 %v529_v28, %v522_v21 }
 0x311   :  { %v531_v32 = vsub.f32 %v115_v29, %v530_v31  ;;  %v536_v33 = vmul.f32 %v675_v7, %v535_v30 }
 0x313   :  { %v540_v34 = vrot.slane %v531_v32, %v898_v63 }
 0x315   :  { %v541_v35 = vadd.f32 %v540_v34, %v536_v33 }
 0x317   :  { %v542_v36 = vmax.f32 %v541_v35, 0.0 }
 0x319   :  { %737 = vmatmul.mubr.f32.vlgmr.msra.gmra.mxu1 %v542_v36 }
 0x3d9   :  { %v613_v38 = vpop.f32.mrf.mxu1 }
 0x3da   :  { %v614_v39 = vadd.f32 %v635_v37, %v613_v38 }
 0x3db   :  { %v738_v40 = vpop.f32.mrf.mxu1 }
 0x3dc   :  { %617 = vst [vmem:[#allocation9] sm:$0xff] %v614_v39 }
 0x3dd   :  { %829 = shalt.err (!%p826_p5)
}
 0x3de   :  { %627 = dma.vmem_to_hbm [thread:$0]  %s625_s2, 128, %s938_s3, [#allocation5]  }
 0x3df   :  { %842 = dma.done.wait [#allocation5], 128  }
 0x3e0   :  { %843 = vsyncadd [#allocation5], 4294967168 }
 0x3e1   :  { %631 = vsyncpa [#allocation4], 1 }
 0x3e2   :  { %632 = vsyncpa [#allocation7], 1 }
 0x3e3   :  { %633 = vsyncpa [#allocation5], 1 }

</bundles_post_ra>
